<compile_context>
chip_gen: v7x
topology: tpu7x:2x2x1
jax: 0.10.0
libtpu: 0.0.40
codegen_flags: <defaults>
</compile_context>

<pallas_src>
import jax
import jax.numpy as jnp
from jax.experimental import pallas as pl
from jax.experimental.pallas import tpu as pltpu

LRELU_SLOPE = 0.1
KERNEL_SIZE = 3
DILATIONS = (1, 3)  # ResBlock2 default dilation=(1, 3)


def _resblock2_kernel(x_ref, m_ref, w_ref, b_ref, o_ref):
    # x_ref: (1, C, T)   one batch element
    # m_ref: (1, 1, T)   mask (ones if the caller passed None)
    # w_ref: (2, K, C, C) effective (weight-normed) conv weights, (layer, tap, out, in)
    # b_ref: (2, C, 1)   conv biases
    # o_ref: (1, C, T)
    x = x_ref[0]          # (C, T)
    mask = m_ref[0]       # (1, T)
    C, T = x.shape

    for layer, dil in enumerate(DILATIONS):   # static 2-iteration loop
        # xt = leaky_relu(x, 0.1) * mask
        xt = jnp.where(x >= 0, x, LRELU_SLOPE * x)
        xt = xt * mask

        # "same"-padded dilated conv (pad = dil for K=3):
        #   out[:, t] = sum_k W_k @ xt[:, t + (k-1)*dil]   (zero outside [0, T))
        zpad = jnp.zeros((C, dil), dtype=xt.dtype)
        taps = (
            jnp.concatenate([zpad, xt[:, : T - dil]], axis=1),  # t - dil
            xt,                                                 # t
            jnp.concatenate([xt[:, dil:], zpad], axis=1),       # t + dil
        )

        acc = jnp.zeros((C, T), dtype=jnp.float32)
        for k in range(KERNEL_SIZE):
            acc = acc + jnp.dot(
                w_ref[layer, k], taps[k], preferred_element_type=jnp.float32
            )
        acc = acc + b_ref[layer]              # (C, 1) broadcasts over lanes

        # residual add
        x = acc.astype(x.dtype) + x

    o_ref[0] = (x * mask).astype(o_ref.dtype)


def resblock2_pallas(x, w, b, x_mask=None):
    """ResBlock2 forward.

    x      : (B, C, T) float32
    w      : (2, K, C, C) effective conv weights (already weight-normed)
    b      : (2, C) conv biases
    x_mask : optional (B, 1, T)
    """
    B, C, T = x.shape
    if x_mask is None:
        x_mask = jnp.ones((B, 1, T), dtype=x.dtype)
    b3 = b.reshape(len(DILATIONS), C, 1)

    flops = 2 * B * len(DILATIONS) * KERNEL_SIZE * C * C * T
    bytes_accessed = 4 * (x.size + x_mask.size + w.size + b.size + x.size)
    cost = pl.CostEstimate(
        flops=flops, transcendentals=0, bytes_accessed=bytes_accessed
    )

    return pl.pallas_call(
        _resblock2_kernel,
        out_shape=jax.ShapeDtypeStruct((B, C, T), x.dtype),
        grid_spec=pltpu.PrefetchScalarGridSpec(
            num_scalar_prefetch=0,
            grid=(B,),
            in_specs=[
                pl.BlockSpec((1, C, T), lambda i: (i, 0, 0)),
                pl.BlockSpec((1, 1, T), lambda i: (i, 0, 0)),
                pl.BlockSpec((len(DILATIONS), KERNEL_SIZE, C, C),
                             lambda i: (0, 0, 0, 0)),
                pl.BlockSpec((len(DILATIONS), C, 1), lambda i: (0, 0, 0)),
            ],
            out_specs=pl.BlockSpec((1, C, T), lambda i: (i, 0, 0)),
        ),
        compiler_params=pltpu.CompilerParams(
            dimension_semantics=("parallel",),
        ),
        cost_estimate=cost,
    )(x, x_mask, w, b3)


def resblock2_ref(x, w, b, x_mask=None):
    """Pure-JAX reference (mirrors the PyTorch module)."""
    B, C, T = x.shape
    if x_mask is None:
        x_mask = jnp.ones((B, 1, T), dtype=x.dtype)
    for layer, dil in enumerate(DILATIONS):
        xt = jnp.where(x >= 0, x, LRELU_SLOPE * x)
        xt = xt * x_mask
        w_oik = jnp.transpose(w[layer], (1, 2, 0))  # (K,Cout,Cin) -> (Cout,Cin,K)
        y = jax.lax.conv_general_dilated(
            xt, w_oik,
            window_strides=(1,),
            padding=[(dil, dil)],
            rhs_dilation=(dil,),
            dimension_numbers=("NCH", "OIH", "NCH"),
        )
        y = y + b[layer][None, :, None]
        x = y + x
    return x * x_mask


if __name__ == "__main__":
    B, C, T = 2, 8, 128  # small, lane-dense T
    key = jax.random.PRNGKey(0)
    kx, kv0, kv1, kg0, kg1, kb = jax.random.split(key, 6)

    x = jax.random.normal(kx, (B, C, T), dtype=jnp.float32)

    # mask: valid prefix per batch element (typical x_mask usage)
    lengths = jnp.array([T, T // 2], dtype=jnp.int32)
    x_mask = (jnp.arange(T)[None, None, :] < lengths[:, None, None]).astype(
        jnp.float32
    )

    def make_weight(kv, kg):
        # init_weights: N(0, 0.01) on v; weight_norm: w = g * v / ||v||_(in,k)
        v = 0.01 * jax.random.normal(kv, (C, C, KERNEL_SIZE), dtype=jnp.float32)
        g = 0.01 + 0.05 * jnp.abs(jax.random.normal(kg, (C,), dtype=jnp.float32))
        norm = jnp.sqrt(jnp.sum(v * v, axis=(1, 2), keepdims=True))
        w_eff = g[:, None, None] * v / norm          # (Cout, Cin, K)
        return jnp.transpose(w_eff, (2, 0, 1))       # (K, Cout, Cin)

    w = jnp.stack([make_weight(kv0, kg0), make_weight(kv1, kg1)], axis=0)
    b = 0.01 * jax.random.normal(kb, (len(DILATIONS), C), dtype=jnp.float32)

    y = resblock2_pallas(x, w, b, x_mask)
    y = jax.block_until_ready(y)

    y_ref = resblock2_ref(x, w, b, x_mask)

    assert y.shape == x.shape, f"shape mismatch: {y.shape} vs {x.shape}"
    assert y.dtype == x.dtype, f"dtype mismatch: {y.dtype} vs {x.dtype}"
    err = float(jnp.max(jnp.abs(y - y_ref)))
    assert jnp.allclose(y, y_ref, rtol=2e-3, atol=2e-3), f"max abs err {err}"

    # masked region must stay exactly zero
    assert float(jnp.max(jnp.abs(y[1, :, T // 2:]))) == 0.0, "mask not applied"

    print("KERNEL_OK")
</pallas_src>

<mosaic_0001>
module attributes {stable_mosaic.version = 11 : i64} {
  func.func @_resblock2_kernel(%arg0: i32, %arg1: memref<1x8x128xf32, #tpu.memory_space<vmem>>, %arg2: memref<1x1x128xf32, #tpu.memory_space<vmem>>, %arg3: memref<2x3x8x8xf32, #tpu.memory_space<vmem>>, %arg4: memref<2x8x1xf32, #tpu.memory_space<vmem>>, %arg5: memref<1x8x128xf32, #tpu.memory_space<vmem>>) attributes {dimension_semantics = [#tpu.dimension_semantics<parallel>], iteration_bounds = array<i64: 2>, scalar_prefetch = 0 : i64, scratch_operands = 0 : i64, tpu.core_type = #tpu.core_type<tc>, window_params = [{transform_indices = @transform_0, window_bounds = array<i64: 1, 8, 128>}, {transform_indices = @transform_1, window_bounds = array<i64: 1, 1, 128>}, {pipeline_mode = #tpu.pipeline_mode<synchronous>, transform_indices = @transform_2, window_bounds = array<i64: 2, 3, 8, 8>}, {pipeline_mode = #tpu.pipeline_mode<synchronous>, transform_indices = @transform_3, window_bounds = array<i64: 2, 8, 1>}, {transform_indices = @transform_4, window_bounds = array<i64: 1, 8, 128>}]} {
    %c0 = arith.constant 0 : index
    %c0_0 = arith.constant 0 : index
    %c0_1 = arith.constant 0 : index
    %0 = vector.load %arg1[%c0, %c0_0, %c0_1] : memref<1x8x128xf32, #tpu.memory_space<vmem>>, vector<1x8x128xf32>
    %1 = vector.shape_cast %0 : vector<1x8x128xf32> to vector<8x128xf32>
    %c0_2 = arith.constant 0 : index
    %c0_3 = arith.constant 0 : index
    %c0_4 = arith.constant 0 : index
    %2 = vector.load %arg2[%c0_2, %c0_3, %c0_4] : memref<1x1x128xf32, #tpu.memory_space<vmem>>, vector<1x1x128xf32>
    %3 = vector.shape_cast %2 : vector<1x1x128xf32> to vector<1x128xf32>
    %cst = arith.constant 0.000000e+00 : f32
    %4 = vector.broadcast %cst : f32 to vector<8x128xf32>
    %5 = arith.cmpf oge, %1, %4 : vector<8x128xf32>
    %cst_5 = arith.constant 1.000000e-01 : f32
    %6 = vector.broadcast %cst_5 : f32 to vector<8x128xf32>
    %7 = arith.mulf %6, %1 : vector<8x128xf32>
    %8 = arith.select %5, %1, %7 : vector<8x128xi1>, vector<8x128xf32>
    %9 = vector.broadcast %3 : vector<1x128xf32> to vector<8x128xf32>
    %10 = arith.mulf %8, %9 : vector<8x128xf32>
    %cst_6 = arith.constant 0.000000e+00 : f32
    %11 = vector.broadcast %cst_6 : f32 to vector<8x1xf32>
    %12 = vector.extract_strided_slice %10 {offsets = [0, 0], sizes = [8, 127], strides = [1, 1]} : vector<8x128xf32> to vector<8x127xf32>
    %13 = tpu.concatenate %11, %12 in 1 : vector<8x1xf32>, vector<8x127xf32> -> vector<8x128xf32>
    %14 = vector.extract_strided_slice %10 {offsets = [0, 1], sizes = [8, 127], strides = [1, 1]} : vector<8x128xf32> to vector<8x127xf32>
    %15 = tpu.concatenate %14, %11 in 1 : vector<8x127xf32>, vector<8x1xf32> -> vector<8x128xf32>
    %cst_7 = arith.constant 0.000000e+00 : f32
    %16 = vector.broadcast %cst_7 : f32 to vector<8x128xf32>
    %c0_8 = arith.constant 0 : index
    %c0_9 = arith.constant 0 : index
    %c0_10 = arith.constant 0 : index
    %c0_11 = arith.constant 0 : index
    %17 = vector.load %arg3[%c0_8, %c0_9, %c0_10, %c0_11] : memref<2x3x8x8xf32, #tpu.memory_space<vmem>>, vector<1x1x8x8xf32>
    %18 = vector.shape_cast %17 : vector<1x1x8x8xf32> to vector<8x8xf32>
    %cst_12 = arith.constant dense<0.000000e+00> : vector<8x128xf32>
    %19 = tpu.matmul %18, %13, %cst_12 {dimension_numbers = #tpu.dot_dimension_numbers<[1], [0], [0], [1], [0, 0, 1, 1], [], []>} : vector<8x8xf32>, vector<8x128xf32>, vector<8x128xf32> -> vector<8x128xf32>
    %20 = arith.addf %16, %19 : vector<8x128xf32>
    %c0_13 = arith.constant 0 : index
    %c1 = arith.constant 1 : index
    %c0_14 = arith.constant 0 : index
    %c0_15 = arith.constant 0 : index
    %21 = vector.load %arg3[%c0_13, %c1, %c0_14, %c0_15] : memref<2x3x8x8xf32, #tpu.memory_space<vmem>>, vector<1x1x8x8xf32>
    %22 = vector.shape_cast %21 : vector<1x1x8x8xf32> to vector<8x8xf32>
    %cst_16 = arith.constant dense<0.000000e+00> : vector<8x128xf32>
    %23 = tpu.matmul %22, %10, %cst_16 {dimension_numbers = #tpu.dot_dimension_numbers<[1], [0], [0], [1], [0, 0, 1, 1], [], []>} : vector<8x8xf32>, vector<8x128xf32>, vector<8x128xf32> -> vector<8x128xf32>
    %24 = arith.addf %20, %23 : vector<8x128xf32>
    %c0_17 = arith.constant 0 : index
    %c2 = arith.constant 2 : index
    %c0_18 = arith.constant 0 : index
    %c0_19 = arith.constant 0 : index
    %25 = vector.load %arg3[%c0_17, %c2, %c0_18, %c0_19] : memref<2x3x8x8xf32, #tpu.memory_space<vmem>>, vector<1x1x8x8xf32>
    %26 = vector.shape_cast %25 : vector<1x1x8x8xf32> to vector<8x8xf32>
    %cst_20 = arith.constant dense<0.000000e+00> : vector<8x128xf32>
    %27 = tpu.matmul %26, %15, %cst_20 {dimension_numbers = #tpu.dot_dimension_numbers<[1], [0], [0], [1], [0, 0, 1, 1], [], []>} : vector<8x8xf32>, vector<8x128xf32>, vector<8x128xf32> -> vector<8x128xf32>
    %28 = arith.addf %24, %27 : vector<8x128xf32>
    %c0_21 = arith.constant 0 : index
    %c0_22 = arith.constant 0 : index
    %c0_23 = arith.constant 0 : index
    %29 = vector.load %arg4[%c0_21, %c0_22, %c0_23] : memref<2x8x1xf32, #tpu.memory_space<vmem>>, vector<1x8x1xf32>
    %30 = vector.shape_cast %29 : vector<1x8x1xf32> to vector<8x1xf32>
    %31 = vector.broadcast %30 : vector<8x1xf32> to vector<8x128xf32>
    %32 = arith.addf %28, %31 : vector<8x128xf32>
    %33 = arith.addf %32, %1 : vector<8x128xf32>
    %cst_24 = arith.constant 0.000000e+00 : f32
    %34 = vector.broadcast %cst_24 : f32 to vector<8x128xf32>
    %35 = arith.cmpf oge, %33, %34 : vector<8x128xf32>
    %cst_25 = arith.constant 1.000000e-01 : f32
    %36 = vector.broadcast %cst_25 : f32 to vector<8x128xf32>
    %37 = arith.mulf %36, %33 : vector<8x128xf32>
    %38 = arith.select %35, %33, %37 : vector<8x128xi1>, vector<8x128xf32>
    %39 = vector.broadcast %3 : vector<1x128xf32> to vector<8x128xf32>
    %40 = arith.mulf %38, %39 : vector<8x128xf32>
    %cst_26 = arith.constant 0.000000e+00 : f32
    %41 = vector.broadcast %cst_26 : f32 to vector<8x3xf32>
    %42 = vector.extract_strided_slice %40 {offsets = [0, 0], sizes = [8, 125], strides = [1, 1]} : vector<8x128xf32> to vector<8x125xf32>
    %43 = tpu.concatenate %41, %42 in 1 : vector<8x3xf32>, vector<8x125xf32> -> vector<8x128xf32>
    %44 = vector.extract_strided_slice %40 {offsets = [0, 3], sizes = [8, 125], strides = [1, 1]} : vector<8x128xf32> to vector<8x125xf32>
    %45 = tpu.concatenate %44, %41 in 1 : vector<8x125xf32>, vector<8x3xf32> -> vector<8x128xf32>
    %cst_27 = arith.constant 0.000000e+00 : f32
    %46 = vector.broadcast %cst_27 : f32 to vector<8x128xf32>
    %c1_28 = arith.constant 1 : index
    %c0_29 = arith.constant 0 : index
    %c0_30 = arith.constant 0 : index
    %c0_31 = arith.constant 0 : index
    %47 = vector.load %arg3[%c1_28, %c0_29, %c0_30, %c0_31] : memref<2x3x8x8xf32, #tpu.memory_space<vmem>>, vector<1x1x8x8xf32>
    %48 = vector.shape_cast %47 : vector<1x1x8x8xf32> to vector<8x8xf32>
    %cst_32 = arith.constant dense<0.000000e+00> : vector<8x128xf32>
    %49 = tpu.matmul %48, %43, %cst_32 {dimension_numbers = #tpu.dot_dimension_numbers<[1], [0], [0], [1], [0, 0, 1, 1], [], []>} : vector<8x8xf32>, vector<8x128xf32>, vector<8x128xf32> -> vector<8x128xf32>
    %50 = arith.addf %46, %49 : vector<8x128xf32>
    %c1_33 = arith.constant 1 : index
    %c1_34 = arith.constant 1 : index
    %c0_35 = arith.constant 0 : index
    %c0_36 = arith.constant 0 : index
    %51 = vector.load %arg3[%c1_33, %c1_34, %c0_35, %c0_36] : memref<2x3x8x8xf32, #tpu.memory_space<vmem>>, vector<1x1x8x8xf32>
    %52 = vector.shape_cast %51 : vector<1x1x8x8xf32> to vector<8x8xf32>
    %cst_37 = arith.constant dense<0.000000e+00> : vector<8x128xf32>
    %53 = tpu.matmul %52, %40, %cst_37 {dimension_numbers = #tpu.dot_dimension_numbers<[1], [0], [0], [1], [0, 0, 1, 1], [], []>} : vector<8x8xf32>, vector<8x128xf32>, vector<8x128xf32> -> vector<8x128xf32>
    %54 = arith.addf %50, %53 : vector<8x128xf32>
    %c1_38 = arith.constant 1 : index
    %c2_39 = arith.constant 2 : index
    %c0_40 = arith.constant 0 : index
    %c0_41 = arith.constant 0 : index
    %55 = vector.load %arg3[%c1_38, %c2_39, %c0_40, %c0_41] : memref<2x3x8x8xf32, #tpu.memory_space<vmem>>, vector<1x1x8x8xf32>
    %56 = vector.shape_cast %55 : vector<1x1x8x8xf32> to vector<8x8xf32>
    %cst_42 = arith.constant dense<0.000000e+00> : vector<8x128xf32>
    %57 = tpu.matmul %56, %45, %cst_42 {dimension_numbers = #tpu.dot_dimension_numbers<[1], [0], [0], [1], [0, 0, 1, 1], [], []>} : vector<8x8xf32>, vector<8x128xf32>, vector<8x128xf32> -> vector<8x128xf32>
    %58 = arith.addf %54, %57 : vector<8x128xf32>
    %c1_43 = arith.constant 1 : index
    %c0_44 = arith.constant 0 : index
    %c0_45 = arith.constant 0 : index
    %59 = vector.load %arg4[%c1_43, %c0_44, %c0_45] : memref<2x8x1xf32, #tpu.memory_space<vmem>>, vector<1x8x1xf32>
    %60 = vector.shape_cast %59 : vector<1x8x1xf32> to vector<8x1xf32>
    %61 = vector.broadcast %60 : vector<8x1xf32> to vector<8x128xf32>
    %62 = arith.addf %58, %61 : vector<8x128xf32>
    %63 = arith.addf %62, %33 : vector<8x128xf32>
    %64 = vector.broadcast %3 : vector<1x128xf32> to vector<8x128xf32>
    %65 = arith.mulf %63, %64 : vector<8x128xf32>
    %c0_46 = arith.constant 0 : index
    %c0_47 = arith.constant 0 : index
    %c0_48 = arith.constant 0 : index
    %66 = vector.load %arg5[%c0_46, %c0_47, %c0_48] : memref<1x8x128xf32, #tpu.memory_space<vmem>>, vector<1x8x128xf32>
    %67 = vector.shape_cast %66 : vector<1x8x128xf32> to vector<8x128xf32>
    %68 = vector.shape_cast %65 : vector<8x128xf32> to vector<1x8x128xf32>
    tpu.vector_store %arg5[%c0_46, %c0_47, %c0_48], %68 {strides = array<i32>} : memref<1x8x128xf32, #tpu.memory_space<vmem>>, vector<1x8x128xf32>,
    return
  }
  func.func @transform_0(%arg0: i32) -> (i32, i32, i32) {
    %c0_i32 = arith.constant 0 : i32
    %c0_i32_0 = arith.constant 0 : i32
    %c0_i32_1 = arith.constant 0 : i32
    return %arg0, %c0_i32, %c0_i32_0 : i32, i32, i32
  }
  func.func @transform_1(%arg0: i32) -> (i32, i32, i32) {
    %c0_i32 = arith.constant 0 : i32
    %c0_i32_0 = arith.constant 0 : i32
    %c0_i32_1 = arith.constant 0 : i32
    return %arg0, %c0_i32, %c0_i32_0 : i32, i32, i32
  }
  func.func @transform_2(%arg0: i32) -> (i32, i32, i32, i32) {
    %c0_i32 = arith.constant 0 : i32
    %c0_i32_0 = arith.constant 0 : i32
    %c0_i32_1 = arith.constant 0 : i32
    %c0_i32_2 = arith.constant 0 : i32
    %c0_i32_3 = arith.constant 0 : i32
    return %c0_i32, %c0_i32_0, %c0_i32_1, %c0_i32_2 : i32, i32, i32, i32
  }
  func.func @transform_3(%arg0: i32) -> (i32, i32, i32) {
    %c0_i32 = arith.constant 0 : i32
    %c0_i32_0 = arith.constant 0 : i32
    %c0_i32_1 = arith.constant 0 : i32
    %c0_i32_2 = arith.constant 0 : i32
    return %c0_i32, %c0_i32_0, %c0_i32_1 : i32, i32, i32
  }
  func.func @transform_4(%arg0: i32) -> (i32, i32, i32) {
    %c0_i32 = arith.constant 0 : i32
    %c0_i32_0 = arith.constant 0 : i32
    %c0_i32_1 = arith.constant 0 : i32
    return %arg0, %c0_i32, %c0_i32_0 : i32, i32, i32
  }
}

</mosaic_0001>

<bundles_post_ra>
// kernel: tpu_custom_call.1
= control target key start
LH: loop header
LB: loop body
LE: loop exit
PB: predicated region body
PF: predicated region fallthrough
CT: control target
= control target key end

     0   :  { %9 = vsyncpa [#allocation3], 0  ;;  %s1259_s0 = inlined_call_operand.vmem [shape: f32[2,8,128], index: 0, kind: input, shape index: {}]   ;;  %s1260_s1 = inlined_call_operand.vmem [shape: f32[2,1,128], index: 1, kind: input, shape index: {}]   ;;  %s1261_s2 = inlined_call_operand.hbm [shape: f32[2,3,8,8], index: 2, kind: input, shape index: {}]   ;;  %s1262_s3 = inlined_call_operand.vmem [shape: f32[2,8,1], index: 3, kind: input, shape index: {}]   ;;  %s1263_s4 = inlined_call_operand.hbm [shape: f32[2,8,128], index: 4, kind: output, shape index: {}]  }
   0x1   :  { %10 = vsyncpa [#allocation4], 0 }
   0x2   :  { %12 = vsyncpa [#allocation4 + $0x1], 0  ;;  %s1086_s15 = smov 0   ;;  %s1088_s16 = smov 0  }
   0x3   :  { %s1090_s17 = smov 0   ;;  %s1092_s18 = smov 0  }
   0x4 LB: > { %s1107_s19 = sadd.s32 4294967295, %s1048_s18   ;;  %s825_s20 = sadd.s32 4294967294, %s1048_s18   ;;  %s1048_s18 = sphi %s1092_s18, %s1279_s18   ;;  %s1044_s17 = sphi %s1090_s17, %s1278_s17   ;;  %s1040_s16 = sphi %s1088_s16, %s1277_s16   ;;  %s1036_s15 = sphi %s1086_s15, %s1276_s15  }
   0x5   : > { %s1111_s21 = sadd.s32 1, %s1048_s18   ;;  %s119_s22 = sadd.s32 1, %s1044_s17 }
   0x6   : > { %s116_s23 = ssub.s32 %s1048_s18, %s1111_s21  ;;  %p129_p0 = scmp.ne.s32.totalorder %s1044_s17, %s1040_s16 }
   0x7   : > { %p117_p1 = scmp.eq.s32.totalorder %s116_s23, 0  ;;  %p130_p2 = scmp.eq.s32.totalorder %s1107_s19, 1 }
   0x8   : > { %p135_p3 = scmp.ne.s32.totalorder %s1040_s16, %s1036_s15  ;;  %p136_p4 = scmp.eq.s32.totalorder %s825_s20, 1 }
   0x9   : > { %s1122_s24 = scalar_select %p117_p1, %s1044_s17, %s119_s22  }
   0xa   : > { %p1124_p5 = por %p130_p2, %p129_p0  ;;  %p1128_p6 = por %p136_p4, %p135_p3 }
   0xb   : > { %p826_p7 = scmp.ge.s32.totalorder %s1048_s18, 1  ;;  %p143_p8 = scmp.lt.s32.totalorder %s1048_s18, 3 }
   0xc   : > { %s1267_s25 = scalar_select %p1124_p5, 1, 0 }
   0xd   : > { %s1268_s26 = scalar_select %p1128_p6, 1, 0 }
   0xe   : > { %p1264_p9 = scmp.eq.s32.totalorder %s1107_s19, 0  ;;  %p1135_p10 = pnand %p826_p7, %p143_p8 }
   0xf   : > { %s1050_s28 = smov [#allocation2]   ;;  %s954_s7 = scalar_lea.hbm %s1261_s2, 768 }
  0x10   : > { %s1269_s27 = scalar_select %p1135_p10, 1, 0 }
  0x11   : > { %s155_s29 = sshll.u32 %s1050_s28, 4  ;;  %p899_p11 = pneg %p1135_p10  ;;  %s156_s29 = int_to_ptr.vmem [resolvable:$true] %s155_s29 }
  0x12   : > { %p955_p13 = scmp.ne.s32.totalorder %s1261_s2, %s954_s7  ;;  %p961_p3 = scmp.lt.u32.totalorder %s954_s7, %s1261_s2 }
  0x13   : > { %p1143_p12 = pnand %p1264_p9, %p899_p11 }
  0x15   : > { %p956_p0 = pneg %p1143_p12 }
  0x17   : > { %p957_p1 = pnand %p956_p0, %p955_p13 }
  0x19   : > { %p958_p2 = pneg %p957_p1 }
  0x1b   : > { %p963_p4 = pnand %p961_p3, %p958_p2 }
  0x1d   : > { %966 = shalt.err (!%p963_p4)
}
  0x1e   : > { %s967_s12 = scalar_lea.vmem %s156_s29, 768  ;;  %p975_p9 = scmp.lt.s32.totalorder %s156_s29, %s156_s29 }
  0x1f   : > { %p968_p7 = scmp.ne.s32.totalorder %s156_s29, %s967_s12  ;;  %p976_p6 = scmp.lt.s32.totalorder %s967_s12, %s967_s12 }
  0x21   : > { %p970_p8 = pnand %p968_p7, %p956_p0  ;;  %p977_p5 = por %p976_p6, %p975_p9 }
  0x23   : > { %p971_p11 = pneg %p970_p8 }
  0x25   : > { %p978_p10 = pnand %p977_p5, %p971_p11 }
  0x27   : > { %981 = shalt.err (!%p978_p10)
}
  0x28   : > { %s1051_s13 = smov 128   ;;  %s1052_s14 = smov 8  }
  0x29   : > { %902 = dma.hbm_to_vmem [thread:$0]  (!%p1143_p12), %s1261_s2, 768, %s156_s29, [#allocation3], %s1051_s13, %s1051_s13, %s1052_s14  }
  0x2a   : > { %p1271_p13 = scmp.ne.s32.totalorder %s1269_s27, 0 }
  0x2b   : > { %p1272_p1 = scmp.eq.s32.totalorder (!%p1271_p13), %s1107_s19, 0 }
  0x2c   : > { %187 = sbr.rel (%p1271_p13) target bundleno = 759 (0x2f7), region = 36 }
  0x33   : > { %1027 = dma.done.wait (%p1272_p1), [#allocation3], 768   ;;  %p1273_p0 = pmov %p1272_p1 }
  0x34   : > { %p215_p5 = scmp.lt.s32.totalorder %s1107_s19, 1  ;;  %v1053_v0 = vmov 0.0   ;;  %vm1054_vm0 = vmmov 0   ;;  %v1055_v1 = vmov 0   ;;  %v471_v5 = vld [vmem:[%s1262_s3] sm:$0xff]  ;;  %v247_v8 = vld [vmem:[#allocation2 + $0x8] sm:$0xff] }
  0x35   : > { %1029 = vsyncadd (%p1273_p0), [#allocation3], 4294966528  ;;  %863 = vmatprep.subr.mxu0 %v1053_v0  ;;  %865 = vmatprep.mubr.msk.f32.mxu0 %vm1054_vm0, %v1053_v0  ;;  %vm248_vm2 = vcmask 64512   ;;  %s1056_s10 = smov 1   ;;  %s1057_s11 = smov 127   ;;  %vm238_vm3 = vcmask 7168  }
  0x36   : > { %s216_s23 = scalar_select %p215_p5, %s1107_s19, 1  ;;  %868 = vmatprep.subr.mxu1 %v1053_v0  ;;  %870 = vmatprep.mubr.msk.f32.mxu1 %vm1054_vm0, %v1053_v0  ;;  %vm835_vm4 = vmneg %vm238_vm3  ;;  %v245_v9 = vld [vmem:[#allocation2] sm:$0xff]  ;;  %vm243_vm5 = vcmask 1039360   ;;  %v396_v11 = vld [vmem:[#allocation2 + $0x10] sm:$0xff]  ;;  %vm487_vm7 = vcmask 23552   ;;  %vm492_vm9 = vcmask 1022976  }
  0x37   : > { %952 = vset.pattern.permute.xlu1 %v1055_v1  ;;  %953 = vset.pattern.permute.xlu0 %v1055_v1  ;;  %v497_v27 = vld [vmem:[#allocation2 + $0x20] sm:$0xff]  ;;  %s1058_s12 = smov 125   ;;  %s1059_s13 = smov 3   ;;  %v846_v28 = vld [vmem:[%s1262_s3 + $0x8] sm:$0xff]  ;;  %vm841_vm8 = vmneg %vm487_vm7 }
  0x38   : > { %s832_s27 = sshll.u32 %s216_s23, 3  ;;  %s221_s7 = scalar_lea.vmem %s1260_s1, %s216_s23  ;;  %474 = vperm.xlu1 %952, %v471_v5   ;;  %v495_v29 = vld [vmem:[#allocation2 + $0x18] sm:$0xff]  ;;  %v645_v30 = vld [vmem:[#allocation2 + $0x28] sm:$0xff] }
  0x39   : > { %s218_s30 = scalar_lea.vmem %s1259_s0, %s832_s27  ;;  %v1183_v3 = vld [vmem:[%s221_s7] ss:$0 sm:$0xff]  ;;  %s212_s22 = sand.u32 1, %s1040_s16  }
  0x3a   : > { %v222_v2 = vld [vmem:[%s218_s30] sm:$0xff]  ;;  %s831_s23 = sshll.u32 %s212_s22, 3  ;;  %s848_s27 = sshll.u32 %s1107_s19, 7 }
  0x3b   : > { %vm224_vm1 = vcmp.ge.f32.partialorder %v222_v2, 0.0  ;;  %v225_v4 = vmul.f32 0.1, %v222_v2  ;;  %s214_s28 = scalar_lea.vmem [#allocation5], %s831_s23  ;;  %s1217_s6 = scalar_lea.hbm %s1263_s4, %s848_s27 }
  0x3c   : > { %s745_s29 = sshll.u32 %s214_s28, 4  ;;  %s732_s7 = scalar_lea.sflag [#allocation4], %s212_s22  ;;  %s1219_s29 = int_to_ptr.vmem [resolvable:$true] %s745_s29 }
  0x3d   : > { %v226_v6 = vsel %vm224_vm1, %v222_v2, %v225_v4  ;;  %s982_s8 = scalar_lea.vmem %s1219_s29, 128  ;;  %p1274_p9 = scmp.ne.s32.totalorder %s1267_s25, 0 }
  0x3e   : > { %v233_v7 = vmul.f32 %v1183_v3, %v226_v6  ;;  %p983_p6 = scmp.ne.s32.totalorder %s1219_s29, %s982_s8  ;;  %s1060_s19 = smov [#allocation5]  }
  0x3f   : > { %s986_s9 = sshll.u32 %s1060_s19, 4  ;;  %s987_s9 = int_to_ptr.vmem [resolvable:$false] %s986_s9 }
  0x40   : > { %235 = vrot.lane.b32.xlu0 %v233_v7, %s1056_s10  ;;  %864 = vmatpush3.msra.mxu0 %v233_v7  ;;  %p984_p10 = pnand %p983_p6, %p1274_p9  ;;  %s988_s10 = scalar_lea.vmem %s987_s9, 256 }
  0x41   : > { %866 = vmatmul.mubr.msk.f32.vlgmr.msra.gmra.mrb[0].mxu0 %vm248_vm2, %v247_v8  ;;  %873 = vmatprep.subr.mxu0 %v1053_v0  ;;  %p989_p2 = scmp.lt.s32.totalorder %s1219_s29, %s987_s9  ;;  %p990_p3 = scmp.lt.s32.totalorder %s988_s10, %s982_s8 }
  0x42   : > { %875 = vmatprep.mubr.msk.f32.mxu0 %vm1054_vm0, %v1053_v0  ;;  %p985_p12 = pneg %p984_p10 }
  0x43   : > { %p991_p4 = por %p990_p3, %p989_p2 }
  0x44   : > { %240 = vrot.lane.b32.xlu0 %v233_v7, %s1057_s11 }
  0x45   : > { %p992_p7 = pnand %p991_p4, %p985_p12 }
  0xb2   : > { %v236_v10 = vpop.permute.xlu0 %235 }
  0xb3   : > { %869 = vmatpush3.msk.msra.mxu1 %vm835_vm4, %v236_v10 }
  0xb4   : > { %871 = vmatmul.mubr.msk.f32.vlgmr.msra.gmra.mrb[0].mxu1 %vm248_vm2, %v245_v9  ;;  %878 = vmatprep.subr.mxu1 %v1053_v0 }
  0xb5   : > { %880 = vmatprep.mubr.msk.f32.mxu1 %vm1054_vm0, %v1053_v0 }
  0xb6   : > { %v241_v12 = vpop.permute.xlu0 %240 }
  0xb7   : > { %874 = vmatpush3.msk.msra.mxu0 %vm243_vm5, %v241_v12  ;;  %v475_v19 = vpop.permute.xlu1 %474 }
  0xb8   : > { %876 = vmatmul.mubr.msk.f32.vlgmr.msra.gmra.mrb[2].mxu0 %vm248_vm2, %v396_v11  ;;  %883 = vmatprep.subr.mxu0 %v1053_v0 }
  0xb9   : > { %885 = vmatprep.mubr.msk.f32.mxu0 %vm1054_vm0, %v1053_v0 }
 0x114   : > { %v318_v13 = vpop.f32.mrb[0].mxu0 }
 0x115   : > { %v867_v14 = vpop.f32.mrb[1].mxu0 }
 0x187   : > { %v391_v15 = vpop.f32.mrb[0].mxu1 }
 0x188   : > { %v392_v16 = vadd.f32 %v391_v15, %v318_v13  ;;  %v872_v17 = vpop.f32.mrb[1].mxu1 }
 0x18b   : > { %v466_v18 = vpop.f32.mrb[2].mxu0 }
 0x18c   : > { %v470_v20 = vadd.f32 %v466_v18, %v392_v16  ;;  %v877_v21 = vpop.f32.mrb[3].mxu0 }
 0x18e   : > { %v477_v22 = vadd.f32 %v475_v19, %v470_v20 }
 0x190   : > { %v478_v23 = vadd.f32 %v477_v22, %v222_v2 }
 0x192   : > { %vm479_vm6 = vcmp.ge.f32.partialorder %v478_v23, 0.0  ;;  %v480_v24 = vmul.f32 0.1, %v478_v23 }
 0x194   : > { %v481_v25 = vsel %vm479_vm6, %v478_v23, %v480_v24 }
 0x195   : > { %v482_v26 = vmul.f32 %v1183_v3, %v481_v25 }
 0x197   : > { %489 = vrot.lane.b32.xlu0 %v482_v26, %s1058_s12  ;;  %484 = vrot.lane.b32.xlu1 %v482_v26, %s1059_s13 }
 0x198   : > { %879 = vmatpush3.msra.mxu1 %v482_v26 }
 0x199   : > { %881 = vmatmul.mubr.msk.f32.vlgmr.msra.gmra.mrb[2].mxu1 %vm248_vm2, %v497_v27  ;;  %888 = vmatprep.subr.mxu1 %v1053_v0 }
 0x19a   : > { %890 = vmatprep.mubr.msk.f32.mxu1 %vm1054_vm0, %v1053_v0 }
 0x19b   : > { %724 = vperm.xlu1 %952, %v846_v28  }
 0x209   : > { %v490_v31 = vpop.permute.xlu0 %489  ;;  %v485_v32 = vpop.permute.xlu1 %484 }
 0x20a   : > { %884 = vmatpush3.msk.msra.mxu0 %vm841_vm8, %v485_v32  ;;  %889 = vmatpush3.msk.msra.mxu1 %vm492_vm9, %v490_v31 }
 0x20b   : > { %886 = vmatmul.mubr.msk.f32.vlgmr.msra.gmra.mrb[4].mxu0 %vm248_vm2, %v495_v29  ;;  %891 = vmatmul.mubr.msk.f32.vlgmr.msra.gmra.mrb[4].mxu1 %vm248_vm2, %v645_v30 }
 0x21a   : > { %v725_v41 = vpop.permute.xlu1 %724 }
 0x26c   : > { %v567_v33 = vpop.f32.mrb[2].mxu1 }
 0x26d   : > { %v882_v34 = vpop.f32.mrb[3].mxu1 }
 0x2de   : > { %v640_v35 = vpop.f32.mrb[4].mxu0  ;;  %v715_v36 = vpop.f32.mrb[4].mxu1 }
 0x2df   : > { %v641_v37 = vadd.f32 %v640_v35, %v567_v33  ;;  %v887_v38 = vpop.f32.mrb[5].mxu0  ;;  %v892_v39 = vpop.f32.mrb[5].mxu1 }
 0x2e1   : > { %v719_v40 = vadd.f32 %v715_v36, %v641_v37 }
 0x2e3   : > { %v727_v42 = vadd.f32 %v725_v41, %v719_v40 }
 0x2e5   : > { %v728_v43 = vadd.f32 %v727_v42, %v478_v23 }
 0x2e7   : > { %v729_v44 = vmul.f32 %v1183_v3, %v728_v43 }
 0x2e9   : > { %730 = vst [vmem:[%s214_s28] sm:$0xff] %v729_v44 }
 0x2ea   : > { %995 = shalt.err (!%p992_p7)
}
 0x2eb   : > { %s996_s11 = scalar_lea.hbm %s1217_s6, 128  ;;  %s1000_s14 = scalar_lea.hbm %s1263_s4, 256 }
 0x2ec   : > { %p997_p8 = scmp.ne.s32.totalorder %s1217_s6, %s996_s11  ;;  %p1001_p1 = scmp.lt.u32.totalorder %s1217_s6, %s1263_s4 }
 0x2ed   : > { %p1002_p0 = scmp.lt.u32.totalorder %s1000_s14, %s996_s11  ;;  %p1004_p6 = scmp.lt.u32.totalorder %s996_s11, %s1217_s6 }
 0x2ee   : > { %p998_p11 = pnand %p997_p8, %p1274_p9 }
 0x2ef   : > { %p1003_p5 = por %p1002_p0, %p1001_p1 }
 0x2f0   : > { %p999_p13 = pneg %p998_p11 }
 0x2f1   : > { %p1005_p10 = por %p1004_p6, %p1003_p5 }
 0x2f3   : > { %p1006_p12 = pnand %p1005_p10, %p999_p13 }
 0x2f5   : > { %1009 = shalt.err (!%p1006_p12)
}
 0x2f6   : > { %897 = dma.vmem_to_hbm [thread:$0]  (%p1274_p9), %s1219_s29, 128, %s1217_s6, %s732_s7  }
 0x2f7 PF: > { %p909_p2 = scmp.ge.s32.totalorder %s1048_s18, 2  ;;  %s757_s23 = sand.u32 1, %s1036_s15  }
 0x2f8   : > { %p1275_p3 = scmp.ne.s32.totalorder %s1268_s26, 0  ;;  %s758_s27 = scalar_lea.sflag [#allocation4], %s757_s23 }
 0x2fa   : > { %p904_p4 = pnand %p909_p2, %p1275_p3 }
 0x2fc   : > { %1031 = dma.done.wait (!%p904_p4), %s758_s27, 128  }
 0x2fd   : > { %1033 = vsyncadd (!%p904_p4), %s758_s27, 4294967168  ;;  %p15_p7 = scmp.ge.s32.totalorder %s1111_s21, 4   ;;  %s1276_s15 = smov %s1040_s16 }
 0x2fe   : > { %s1277_s16 = smov %s1044_s17  ;;  %s1278_s17 = smov %s1122_s24 }
 0x2ff   : > { %s1279_s18 = smov %s1111_s21  ;;  %17 = sbr.rel (!%p15_p7) target bundleno = 4 (0x4), region = 85 }
 0x306   :  { %763 = vsyncpa [#allocation3], 1 }
 0x307   :  { %765 = vsyncpa [#allocation3 + $0x1], 1 }
 0x308   :  { %766 = vsyncpa [#allocation4], 1 }
 0x309   :  { %768 = vsyncpa [#allocation4 + $0x1], 1 }

</bundles_post_ra>
